<compile_context>
chip_gen: v7x
topology: tpu7x:2x2x1
jax: 0.10.0
libtpu: 0.0.40
codegen_flags: <defaults>
</compile_context>

<pallas_src>
import functools

import jax
import jax.numpy as jnp
from jax.experimental import pallas as pl
from jax.experimental.pallas import tpu as pltpu


_MIB = 1024 * 1024


# --------------------------------------------------------------------------- #
# VMEM budgeting (generation aware).                                          #
# --------------------------------------------------------------------------- #
def _physical_vmem_bytes():
    try:
        info = pltpu.get_tpu_info()
        v = getattr(info, "vmem_capacity_bytes", None)
        if v:
            return int(v)
    except Exception:
        pass
    return 64 * _MIB  # conservative (v7x-sized) fallback


def _vmem_plan():
    phys = _physical_vmem_bytes()
    # Scoped limit we are willing to request: 3/4 of physical, capped at 96 MiB
    # (v5e/v6e: 96 MiB, v7x: 48 MiB).
    limit = int(min(phys * 3 // 4, 96 * _MIB))
    return phys, limit


# --------------------------------------------------------------------------- #
# Tiling helpers.                                                             #
# --------------------------------------------------------------------------- #
def _fold_factor(C, N):
    """Smallest S > 1 such that C*S is a multiple of 8 and S divides N."""
    if C % 8 == 0:
        return 1
    for S in (2, 4, 8):
        if (C * S) % 8 == 0 and N % S == 0:
            return S
    return 1


def _largest_lane_tile(n, per_lane_bytes, budget):
    """Largest multiple-of-128 divisor of n whose tile fits the byte budget."""
    best = None
    cap = min(n, budget // max(per_lane_bytes, 1))
    t = 128
    while t <= cap:
        if n % t == 0:
            best = t
        t += 128
    return best


def _plan_tiles(B, C2, N2, itemsize, block_budget):
    """Pick block dims (Bb, Ct, T) for the (B, C2, N2) layout."""
    # Channel (sublane) tile: tile C only when it is large and 8-divisible.
    if C2 * 128 * itemsize <= block_budget or C2 % 8 != 0:
        Ct = C2
    else:
        Ct = None
        cap = min(C2, block_budget // (128 * itemsize))
        d = 8
        while d <= cap:
            if C2 % d == 0:
                Ct = d
            d += 8
        Ct = Ct if Ct is not None else C2

    # Spatial (lane) tile: largest 128-multiple divisor that fits; full extent
    # if everything fits (or if N2 has no 128-multiple divisor).
    if Ct * N2 * itemsize <= block_budget:
        T = N2
    else:
        T = _largest_lane_tile(N2, Ct * itemsize, block_budget)
        if T is None:
            T = N2  # awkward extent: take full lanes, vmem limit is bumped below

    # Batch blocking only when a whole (C2, N2) slab fits in the budget.
    Bb = 1
    if Ct == C2 and T == N2:
        cap = min(B, block_budget // max(C2 * N2 * itemsize, 1))
        d = 1
        while d <= cap:
            if B % d == 0:
                Bb = d
            d += 1
    return Bb, Ct, T


# --------------------------------------------------------------------------- #
# Kernels.                                                                    #
# --------------------------------------------------------------------------- #
def _fused_kernel(x_ref, o_ref, *, target_min, target_max, epsilon):
    """Single-pass: whole array resident in VMEM."""
    x = x_ref[...]                                                  # (B, C, N)
    mn = jnp.min(jnp.min(x, axis=2, keepdims=True), axis=0, keepdims=True)
    mx = jnp.max(jnp.max(x, axis=2, keepdims=True), axis=0, keepdims=True)
    mn = mn.astype(jnp.float32)
    mx = mx.astype(jnp.float32)
    scale = (target_max - target_min) / (mx - mn + epsilon)         # (1, C, 1)
    offset = target_min - mn * scale
    o_ref[...] = (x.astype(jnp.float32) * scale + offset).astype(o_ref.dtype)


def _stats_kernel(x_ref, mn_ref, mx_ref):
    """Pass 1: per-(batch-block, channel) running min/max in native dtype."""
    t = pl.program_id(2)
    x = x_ref[...]                                                  # (Bb, Ct, T)
    tile_mn = jnp.min(x, axis=2, keepdims=True)                     # (Bb, Ct, 1)
    tile_mx = jnp.max(x, axis=2, keepdims=True)

    @pl.when(t == 0)
    def _init():
        mn_ref[...] = tile_mn
        mx_ref[...] = tile_mx

    @pl.when(t > 0)
    def _update():
        mn_ref[...] = jnp.minimum(mn_ref[...], tile_mn)
        mx_ref[...] = jnp.maximum(mx_ref[...], tile_mx)


def _apply_kernel(x_ref, scale_ref, offset_ref, o_ref):
    """Pass 2: per-element affine, f32 compute, cast at the store."""
    x = x_ref[...].astype(jnp.float32)                              # (Bb, Ct, T)
    o_ref[...] = (x * scale_ref[...] + offset_ref[...]).astype(o_ref.dtype)


# --------------------------------------------------------------------------- #
# Wrapper.                                                                    #
# --------------------------------------------------------------------------- #
def mean_variance_regularization(x, target_range=(0.0, 1.0), epsilon=1e-8,
                                 *, force_two_pass=False,
                                 block_budget_bytes=None):
    """x: (B, C, H, W). Per-channel min/max normalization to target_range."""
    target_min = float(target_range[0])
    target_max = float(target_range[1])
    epsilon = float(epsilon)

    B, C, H, W = x.shape
    N = H * W
    itemsize = jnp.dtype(x.dtype).itemsize
    total = B * C * N

    phys, vmem_limit = _vmem_plan()

    # ---------------- fused single-pass fast path --------------------------- #
    # footprint ~ 2x in + 2x out (native, double-buffered) + ~2 f32 temporaries
    fused_footprint = total * (4 * itemsize + 2 * 4)
    if not force_two_pass and fused_footprint <= vmem_limit:
        x3 = x.reshape(B, C, N)                      # free reshape, no transpose
        kern = functools.partial(_fused_kernel, target_min=target_min,
                                 target_max=target_max, epsilon=epsilon)
        out3 = pl.pallas_call(
            kern,
            out_shape=jax.ShapeDtypeStruct((B, C, N), x.dtype),
            grid=(1,),
            in_specs=[pl.BlockSpec((B, C, N), lambda i: (0, 0, 0))],
            out_specs=pl.BlockSpec((B, C, N), lambda i: (0, 0, 0)),
            compiler_params=pltpu.CompilerParams(
                vmem_limit_bytes=int(min(phys - 2 * _MIB,
                                         max(vmem_limit,
                                             fused_footprint + 2 * _MIB))),
            ),
        )(x3)
        return out3.reshape(B, C, H, W)

    # ---------------- two-pass tiled path ------------------------------------ #
    # Fold spatial samples into the sublane axis when C % 8 != 0 (full packing).
    S = _fold_factor(C, N)
    C2, N2 = C * S, N // S
    x3 = x.reshape(B, C2, N2)                        # identical HBM layout

    block_budget = (block_budget_bytes if block_budget_bytes is not None
                    else vmem_limit // 6)
    Bb, Ct, T = _plan_tiles(B, C2, N2, itemsize, block_budget)
    GB, CB, NT = B // Bb, C2 // Ct, N2 // T

    blk_bytes = Bb * Ct * T * itemsize
    # pass-2 footprint: in + out blocks double-buffered + f32 compute temp
    needed = 4 * blk_bytes + Bb * Ct * T * 4 + 2 * _MIB
    pass_vmem = int(min(phys - 2 * _MIB, max(vmem_limit, needed)))
    # TODO(synk): extremely awkward shapes (huge C not divisible by 8, or huge
    # non-128-aligned H*W) could still exceed physical VMEM; tiling those would
    # need padded / Element-style BlockSpecs.

    # Pass 1: per-(batch, channel) partial min/max. Batch & channel axes are
    # independent (partial outputs indexed by them) -> safe to mark "parallel".
    pmn, pmx = pl.pallas_call(
        _stats_kernel,
        out_shape=(jax.ShapeDtypeStruct((B, C2, 1), x.dtype),
                   jax.ShapeDtypeStruct((B, C2, 1), x.dtype)),
        grid=(GB, CB, NT),
        in_specs=[pl.BlockSpec((Bb, Ct, T), lambda b, c, t: (b, c, t))],
        out_specs=(pl.BlockSpec((Bb, Ct, 1), lambda b, c, t: (b, c, 0)),
                   pl.BlockSpec((Bb, Ct, 1), lambda b, c, t: (b, c, 0))),
        compiler_params=pltpu.CompilerParams(
            dimension_semantics=("parallel", "parallel", "arbitrary"),
            vmem_limit_bytes=pass_vmem,
        ),
    )(x3)

    # Tiny cross-batch / cross-fold reduce + affine coefficients in plain JAX.
    mn = jnp.min(pmn.reshape(B, C, S), axis=(0, 2)).astype(jnp.float32)   # (C,)
    mx = jnp.max(pmx.reshape(B, C, S), axis=(0, 2)).astype(jnp.float32)
    scale_c = (target_max - target_min) / (mx - mn + epsilon)
    offset_c = target_min - mn * scale_c
    scale = jnp.repeat(scale_c, S).reshape(C2, 1)                  # (C2, 1) f32
    offset = jnp.repeat(offset_c, S).reshape(C2, 1)

    # Pass 2: x * scale + offset, fully independent lane-dense tiles.
    out3 = pl.pallas_call(
        _apply_kernel,
        out_shape=jax.ShapeDtypeStruct((B, C2, N2), x.dtype),
        grid=(GB, CB, NT),
        in_specs=[pl.BlockSpec((Bb, Ct, T), lambda b, c, t: (b, c, t)),
                  pl.BlockSpec((Ct, 1), lambda b, c, t: (c, 0)),
                  pl.BlockSpec((Ct, 1), lambda b, c, t: (c, 0))],
        out_specs=pl.BlockSpec((Bb, Ct, T), lambda b, c, t: (b, c, t)),
        compiler_params=pltpu.CompilerParams(
            dimension_semantics=("parallel", "parallel", "parallel"),
            vmem_limit_bytes=pass_vmem,
        ),
    )(x3, scale, offset)

    return out3.reshape(B, C, H, W)


# --------------------------------------------------------------------------- #
# Reference & self-test.                                                      #
# --------------------------------------------------------------------------- #
def _reference(x, target_range=(0.0, 1.0), epsilon=1e-8):
    tmin, tmax = target_range
    mn = jnp.min(x, axis=(0, 2, 3), keepdims=True)
    mx = jnp.max(x, axis=(0, 2, 3), keepdims=True)
    xn = (x - mn) / (mx - mn + epsilon)
    return xn * (tmax - tmin) + tmin


if __name__ == "__main__":
    key = jax.random.PRNGKey(0)

    # 1) Small input -> fused single-pass fast path.
    B, C, H, W = 2, 4, 16, 16
    x = jax.random.normal(key, (B, C, H, W), dtype=jnp.float32) * 3.0 + 1.5
    out = mean_variance_regularization(x, target_range=(0.0, 1.0), epsilon=1e-8)
    out = jax.block_until_ready(out)
    ref = _reference(x, target_range=(0.0, 1.0), epsilon=1e-8)
    assert out.shape == x.shape and out.dtype == x.dtype
    assert jnp.allclose(out, ref, atol=1e-5, rtol=1e-5), \
        float(jnp.max(jnp.abs(out - ref)))

    # 2) Forced two-pass tiled path with a tiny block budget so the grid has
    #    multiple batch- and lane-tiles (exercises partial-stats + fold logic).
    B2, C2_, H2, W2 = 4, 4, 32, 32
    x2 = (jax.random.normal(jax.random.PRNGKey(1), (B2, C2_, H2, W2),
                            dtype=jnp.float32) * 2.0 - 0.5)
    out2 = mean_variance_regularization(
        x2, target_range=(-1.0, 1.0), epsilon=1e-6,
        force_two_pass=True, block_budget_bytes=8 * 128 * 4)
    out2 = jax.block_until_ready(out2)
    ref2 = _reference(x2, target_range=(-1.0, 1.0), epsilon=1e-6)
    assert out2.shape == x2.shape and out2.dtype == x2.dtype
    assert jnp.allclose(out2, ref2, atol=1e-5, rtol=1e-5), \
        float(jnp.max(jnp.abs(out2 - ref2)))

    print("KERNEL_OK")
</pallas_src>

<mosaic_0001>
module attributes {stable_mosaic.version = 11 : i64} {
  func.func @_fused_kernel(%arg0: i32, %arg1: memref<2x4x256xf32, #tpu.memory_space<vmem>>, %arg2: memref<2x4x256xf32, #tpu.memory_space<vmem>>) attributes {dimension_semantics = [#tpu.dimension_semantics<arbitrary>], iteration_bounds = array<i64: 1>, scalar_prefetch = 0 : i64, scratch_operands = 0 : i64, tpu.core_type = #tpu.core_type<tc>, window_params = [{pipeline_mode = #tpu.pipeline_mode<synchronous>, transform_indices = @transform_0, window_bounds = array<i64: 2, 4, 256>}, {pipeline_mode = #tpu.pipeline_mode<synchronous>, transform_indices = @transform_1, window_bounds = array<i64: 2, 4, 256>}]} {
    %c0 = arith.constant 0 : index
    %c0_0 = arith.constant 0 : index
    %c0_1 = arith.constant 0 : index
    %0 = vector.load %arg1[%c0, %c0_0, %c0_1] : memref<2x4x256xf32, #tpu.memory_space<vmem>>, vector<2x4x256xf32>
    %cst = arith.constant dense<0x7F800000> : vector<2x4xf32>
    %1 = vector.multi_reduction <minimumf>, %0, %cst [2] : vector<2x4x256xf32> to vector<2x4xf32>
    %2 = vector.shape_cast %1 : vector<2x4xf32> to vector<2x4x1xf32>
    %cst_2 = arith.constant dense<0x7F800000> : vector<4x1xf32>
    %3 = vector.multi_reduction <minimumf>, %2, %cst_2 [0] : vector<2x4x1xf32> to vector<4x1xf32>
    %4 = vector.shape_cast %3 : vector<4x1xf32> to vector<1x4x1xf32>
    %cst_3 = arith.constant dense<0xFF800000> : vector<2x4xf32>
    %5 = vector.multi_reduction <maximumf>, %0, %cst_3 [2] : vector<2x4x256xf32> to vector<2x4xf32>
    %6 = vector.shape_cast %5 : vector<2x4xf32> to vector<2x4x1xf32>
    %cst_4 = arith.constant dense<0xFF800000> : vector<4x1xf32>
    %7 = vector.multi_reduction <maximumf>, %6, %cst_4 [0] : vector<2x4x1xf32> to vector<4x1xf32>
    %8 = vector.shape_cast %7 : vector<4x1xf32> to vector<1x4x1xf32>
    %9 = arith.subf %8, %4 : vector<1x4x1xf32>
    %cst_5 = arith.constant 9.99999993E-9 : f32
    %10 = vector.broadcast %cst_5 : f32 to vector<1x4x1xf32>
    %11 = arith.addf %9, %10 : vector<1x4x1xf32>
    %cst_6 = arith.constant 1.000000e+00 : f32
    %12 = vector.broadcast %cst_6 : f32 to vector<1x4x1xf32>
    %13 = arith.divf %12, %11 : vector<1x4x1xf32>
    %14 = arith.mulf %4, %13 : vector<1x4x1xf32>
    %cst_7 = arith.constant 0.000000e+00 : f32
    %15 = vector.broadcast %cst_7 : f32 to vector<1x4x1xf32>
    %16 = arith.subf %15, %14 : vector<1x4x1xf32>
    %17 = vector.broadcast %13 : vector<1x4x1xf32> to vector<2x4x256xf32>
    %18 = arith.mulf %0, %17 : vector<2x4x256xf32>
    %19 = vector.broadcast %16 : vector<1x4x1xf32> to vector<2x4x256xf32>
    %20 = arith.addf %18, %19 : vector<2x4x256xf32>
    %c0_8 = arith.constant 0 : index
    %c0_9 = arith.constant 0 : index
    %c0_10 = arith.constant 0 : index
    %21 = vector.load %arg2[%c0_8, %c0_9, %c0_10] : memref<2x4x256xf32, #tpu.memory_space<vmem>>, vector<2x4x256xf32>
    tpu.vector_store %arg2[%c0_8, %c0_9, %c0_10], %20 {strides = array<i32>} : memref<2x4x256xf32, #tpu.memory_space<vmem>>, vector<2x4x256xf32>,
    return
  }
  func.func @transform_0(%arg0: i32) -> (i32, i32, i32) {
    %c0_i32 = arith.constant 0 : i32
    %c0_i32_0 = arith.constant 0 : i32
    %c0_i32_1 = arith.constant 0 : i32
    %c0_i32_2 = arith.constant 0 : i32
    return %c0_i32, %c0_i32_0, %c0_i32_1 : i32, i32, i32
  }
  func.func @transform_1(%arg0: i32) -> (i32, i32, i32) {
    %c0_i32 = arith.constant 0 : i32
    %c0_i32_0 = arith.constant 0 : i32
    %c0_i32_1 = arith.constant 0 : i32
    %c0_i32_2 = arith.constant 0 : i32
    return %c0_i32, %c0_i32_0, %c0_i32_1 : i32, i32, i32
  }
}

</mosaic_0001>

<bundles_post_ra>
// kernel: tpu_custom_call.1
= control target key start
LH: loop header
LB: loop body
LE: loop exit
PB: predicated region body
PF: predicated region fallthrough
CT: control target
= control target key end

     0   :  { %6 = vsyncpa [#allocation3], 0  ;;  %s219_s0 = inlined_call_operand.hbm [shape: f32[2,4,256], index: 0, kind: input, shape index: {}]   ;;  %s220_s1 = inlined_call_operand.hbm [shape: f32[2,4,256], index: 1, kind: output, shape index: {}]  }
   0x1   :  { %7 = vsyncpa [#allocation4], 0  ;;  %s162_s6 = smov [#allocation2]   ;;  %s114_s10 = scalar_lea.hbm %s219_s0, 256 }
   0x2   :  { %s13_s7 = sshll.u32 %s162_s6, 4  ;;  %p115_p0 = scmp.ne.s32.totalorder %s219_s0, %s114_s10  ;;  %s14_s7 = int_to_ptr.vmem [resolvable:$true] %s13_s7 }
   0x3   :  { %p118_p1 = scmp.lt.u32.totalorder %s114_s10, %s219_s0 }
   0x5   :  { %p120_p2 = pnand %p118_p1, %p115_p0 }
   0x7   :  { %123 = shalt.err (!%p120_p2)
}
   0x8   :  { %s124_s15 = scalar_lea.vmem %s14_s7, 256  ;;  %p129_p4 = scmp.lt.s32.totalorder %s14_s7, %s14_s7 }
   0x9   :  { %p125_p3 = scmp.ne.s32.totalorder %s14_s7, %s124_s15  ;;  %p130_p5 = scmp.lt.s32.totalorder %s124_s15, %s124_s15 }
   0xb   :  { %p131_p6 = por %p130_p5, %p129_p4 }
   0xd   :  { %p132_p7 = pnand %p131_p6, %p125_p3 }
   0xf   :  { %135 = shalt.err (!%p132_p7)
}
  0x10   :  { %s163_s16 = smov 128   ;;  %s164_s17 = smov 8  }
  0x11   :  { %19 = dma.hbm_to_vmem [thread:$0]  %s219_s0, 256, %s14_s7, [#allocation3], %s163_s16, %s163_s16, %s164_s17  }
  0x12   :  { %158 = dma.done.wait [#allocation3], 256  }
  0x13   :  { %159 = vsyncadd [#allocation3], 4294967040  ;;  %vm31_vm0 = vcmask 1043456   ;;  %v23_v0 = vld [vmem:[#allocation2] sm:$0xff]  ;;  %v24_v1 = vld [vmem:[#allocation2 + $0x8] sm:$0xff]  ;;  %v68_v30 = vlaneseq  ;;  %s166_s0 = smov [#allocation5]  }
  0x14   :  { %v27_v2 = vcombine.high %v23_v0, %v23_v0  ;;  %v45_v3 = vsel %vm31_vm0, %v23_v0, -inf  ;;  %v32_v4 = vsel %vm31_vm0, %v23_v0, inf  ;;  %v28_v5 = vcombine.high %v24_v1, %v24_v1  ;;  %s93_s20 = sshll.u32 %s166_s0, 4  ;;  %s94_s20 = int_to_ptr.vmem [resolvable:$true] %s93_s20 }
  0x15   :  { %v50_v6 = vsel %vm31_vm0, %v24_v1, -inf  ;;  %v37_v7 = vsel %vm31_vm0, %v24_v1, inf  ;;  %v165_v28 = vmov 839922192   ;;  %v69_v32 = vshrl.u32 %v68_v30, 7  ;;  %s136_s21 = scalar_lea.vmem %s94_s20, 256  ;;  %p141_p9 = scmp.lt.s32.totalorder %s94_s20, %s94_s20 }
  0x16   :  { %v46_v8 = vsel %vm31_vm0, %v27_v2, -inf  ;;  %v33_v9 = vsel %vm31_vm0, %v27_v2, inf  ;;  %v51_v10 = vsel %vm31_vm0, %v28_v5, -inf  ;;  %v38_v11 = vsel %vm31_vm0, %v28_v5, inf  ;;  %p137_p8 = scmp.ne.s32.totalorder %s94_s20, %s136_s21  ;;  %p142_p10 = scmp.lt.s32.totalorder %s136_s21, %s136_s21 }
  0x17   :  { %v47_v12 = vmax.f32 %v45_v3, %v46_v8  ;;  %v34_v13 = vmin.f32 %v32_v4, %v33_v9  ;;  %v52_v14 = vmax.f32 %v50_v6, %v51_v10  ;;  %v39_v15 = vmin.f32 %v37_v7, %v38_v11 }
  0x18   :  { %v66_v29 = vunpack.c.l.s4 %v165_v28  ;;  %p143_p11 = por %p142_p10, %p141_p9 }
  0x19   :  { %48 = vmax.xlane.f32.xlu1 %v47_v12  ;;  %35 = vmin.xlane.f32.xlu0 %v34_v13 }
  0x1a   :  { %v67_v31 = vunpack.c.0.s8 %v66_v29  ;;  %p144_p12 = pnand %p143_p11, %p137_p8 }
  0x1c   :  { %v70_v33 = vsub.s32 %v67_v31, %v69_v32 }
  0x1d   :  { %53 = vmax.xlane.f32.xlu1 %v52_v14  ;;  %40 = vmin.xlane.f32.xlu0 %v39_v15 }
  0xa6   :  { %v49_v16 = vpop.xlane.xlu1 %48  ;;  %v36_v17 = vpop.xlane.xlu0 %35 }
  0xa7   :  { %v55_v20 = vsel %vm31_vm0, %v49_v16, -inf  ;;  %v42_v21 = vsel %vm31_vm0, %v36_v17, inf }
  0xaa   :  { %v54_v18 = vpop.xlane.xlu1 %53  ;;  %v41_v19 = vpop.xlane.xlu0 %40 }
  0xab   :  { %v56_v22 = vsel %vm31_vm0, %v54_v18, -inf  ;;  %v43_v23 = vsel %vm31_vm0, %v41_v19, inf }
  0xac   :  { %v57_v24 = vmax.f32 %v55_v20, %v56_v22  ;;  %v44_v25 = vmin.f32 %v42_v21, %v43_v23 }
  0xae   :  { %v58_v26 = vsub.f32 %v57_v24, %v44_v25 }
  0xb0   :  { %v59_v27 = vadd.f32 1e-08, %v58_v26 }
  0xb2   :  { %112 = vrcp.f32 %v59_v27 }
  0xbc   :  { %v113_v34 = vpop.eup %112 }
  0xbd   :  { %v62_v35 = vmul.f32 %v113_v34, %v44_v25  ;;  %v71_v36 = vrot.slane %v113_v34, %v70_v33 }
  0xbf   :  { %v63_v37 = vsub.f32 0.0, %v62_v35  ;;  %v73_v39 = vmul.f32 %v71_v36, %v23_v0  ;;  %v74_v40 = vmul.f32 %v71_v36, %v24_v1 }
  0xc1   :  { %v82_v38 = vrot.slane %v63_v37, %v70_v33 }
  0xc3   :  { %v84_v41 = vadd.f32 %v82_v38, %v73_v39  ;;  %v85_v42 = vadd.f32 %v82_v38, %v74_v40 }
  0xc5   :  { %86 = vst [vmem:[#allocation5] sm:$0xff] %v84_v41  ;;  %87 = vst [vmem:[#allocation5 + $0x8] sm:$0xff] %v85_v42 }
  0xc6   :  { %147 = shalt.err (!%p144_p12)
}
  0xc7   :  { %s148_s24 = scalar_lea.hbm %s220_s1, 256 }
  0xc8   :  { %p149_p13 = scmp.ne.s32.totalorder %s220_s1, %s148_s24  ;;  %p152_p0 = scmp.lt.u32.totalorder %s148_s24, %s220_s1 }
  0xca   :  { %p154_p1 = pnand %p152_p0, %p149_p13 }
  0xcc   :  { %157 = shalt.err (!%p154_p1)
}
  0xcd   :  { %99 = dma.vmem_to_hbm [thread:$0]  %s94_s20, 256, %s220_s1, [#allocation4], %s163_s16, %s163_s16, %s164_s17  }
  0xce   :  { %160 = dma.done.wait [#allocation4], 256  }
  0xcf   :  { %161 = vsyncadd [#allocation4], 4294967040 }
  0xd0   :  { %103 = vsyncpa [#allocation3], 1 }
  0xd1   :  { %104 = vsyncpa [#allocation4], 1 }

</bundles_post_ra>
